<compile_context>
chip_gen: v5e
topology: v5e:2x2
jax: 0.10.0
libtpu: 0.0.40
codegen_flags: <defaults>
</compile_context>

<pallas_src>
import functools
import math

import jax
import jax.numpy as jnp
from jax import lax
from jax.experimental import pallas as pl
from jax.experimental.pallas import tpu as pltpu


# ---------------------------------------------------------------------------
# Fused Pallas kernel: one grid step == one batch element, full layer.
# ---------------------------------------------------------------------------

def _fused_layer_kernel(*refs, num_heads, head_dim, eps, has_ffn):
    if has_ffn:
        (x_ref, wqkv_ref, bqkv_ref, wout_ref, bout_ref, g1_ref, b1_ref,
         wff1_ref, bff1_ref, wff2_ref, bff2_ref, g2_ref, b2_ref,
         o_ref) = refs
    else:
        (x_ref, wqkv_ref, bqkv_ref, wout_ref, bout_ref, g1_ref, b1_ref,
         o_ref) = refs

    H, Dh = num_heads, head_dim
    E = H * Dh

    x = x_ref[0]                                  # (L, E) f32
    x_bf = x.astype(jnp.bfloat16)

    # ---- packed QKV projection: bf16 MXU operands, f32 accumulation ----
    qkv = jnp.dot(x_bf, wqkv_ref[...],
                  preferred_element_type=jnp.float32) + bqkv_ref[...]
    q = qkv[:, 0:E]
    k = qkv[:, E:2 * E]
    v = qkv[:, 2 * E:3 * E]

    scale = 1.0 / math.sqrt(Dh)
    contract_last = (((1,), (1,)), ((), ()))      # q @ k^T without explicit .T

    # ---- per-head attention; heads unrolled, merged output is lane-dense ----
    # TODO(synk): for long sequence lengths, tile over the KV axis with online
    # softmax (flash pattern) instead of materializing full (L, L) scores.
    head_outs = []
    for h in range(H):
        lo, hi = h * Dh, (h + 1) * Dh
        q_h = q[:, lo:hi].astype(jnp.bfloat16)
        k_h = k[:, lo:hi].astype(jnp.bfloat16)
        v_h = v[:, lo:hi].astype(jnp.bfloat16)
        s = lax.dot_general(q_h, k_h, contract_last,
                            preferred_element_type=jnp.float32) * scale
        s = s - jnp.max(s, axis=-1, keepdims=True)      # f32 softmax (VPU/EUP)
        p = jnp.exp(s)
        p = p * pl.reciprocal(jnp.sum(p, axis=-1, keepdims=True), approx=True)
        head_outs.append(jnp.dot(p.astype(jnp.bfloat16), v_h,
                                 preferred_element_type=jnp.float32))
    attn = jnp.concatenate(head_outs, axis=-1)    # (L, E), merged in-register

    # ---- out projection + residual + LayerNorm1 (all f32 elementwise) ----
    attn = jnp.dot(attn.astype(jnp.bfloat16), wout_ref[...],
                   preferred_element_type=jnp.float32) + bout_ref[...]
    z = x + attn
    mean = jnp.mean(z, axis=-1, keepdims=True)
    var = jnp.mean(jnp.square(z - mean), axis=-1, keepdims=True)
    x1 = (z - mean) * lax.rsqrt(var + eps) * g1_ref[...] + b1_ref[...]

    # ---- optional feed-forward block + residual + LayerNorm2 ----
    if has_ffn:
        h1 = jnp.dot(x1.astype(jnp.bfloat16), wff1_ref[...],
                     preferred_element_type=jnp.float32) + bff1_ref[...]
        h1 = jnp.maximum(h1, 0.0)                 # ReLU in f32
        ff = jnp.dot(h1.astype(jnp.bfloat16), wff2_ref[...],
                     preferred_element_type=jnp.float32) + bff2_ref[...]
        z2 = x1 + ff
        mean2 = jnp.mean(z2, axis=-1, keepdims=True)
        var2 = jnp.mean(jnp.square(z2 - mean2), axis=-1, keepdims=True)
        x1 = (z2 - mean2) * lax.rsqrt(var2 + eps) * g2_ref[...] + b2_ref[...]

    o_ref[0] = x1


# ---------------------------------------------------------------------------
# Forward wrapper (single pallas_call)
# ---------------------------------------------------------------------------

def attention_layer_forward(x, kparams, num_heads, eps=1e-5):
    """Mirrors AttentionLayer.forward (dropout = identity). x: (L, B, E)."""
    L, B, E = x.shape
    H = num_heads
    assert E % H == 0, "embed_dim must be divisible by num_heads"
    Dh = E // H
    has_ffn = "ff1_w" in kparams

    # Batch-major layout so each grid step gets a lane-dense (L, E) block.
    x_b = jnp.transpose(x, (1, 0, 2))             # (B, L, E), tiny one-time copy

    inputs = [
        x_b,
        kparams["in_proj_w"], kparams["in_proj_b"],
        kparams["out_proj_w"], kparams["out_proj_b"],
        kparams["ln1_g"], kparams["ln1_b"],
    ]
    if has_ffn:
        inputs += [
            kparams["ff1_w"], kparams["ff1_b"],
            kparams["ff2_w"], kparams["ff2_b"],
            kparams["ln2_g"], kparams["ln2_b"],
        ]

    def full_spec(arr):
        nd = arr.ndim
        return pl.BlockSpec(arr.shape, lambda b, _nd=nd: (0,) * _nd)

    in_specs = [pl.BlockSpec((1, L, E), lambda b: (b, 0, 0))]
    in_specs += [full_spec(a) for a in inputs[1:]]

    out = pl.pallas_call(
        functools.partial(_fused_layer_kernel, num_heads=H, head_dim=Dh,
                          eps=eps, has_ffn=has_ffn),
        out_shape=jax.ShapeDtypeStruct((B, L, E), jnp.float32),
        grid=(B,),
        in_specs=in_specs,
        out_specs=pl.BlockSpec((1, L, E), lambda b: (b, 0, 0)),
        compiler_params=pltpu.CompilerParams(
            dimension_semantics=("parallel",)),   # shards batch over TCs (v7x)
    )(*inputs)

    return jnp.transpose(out, (1, 0, 2))          # back to (L, B, E)


# ---------------------------------------------------------------------------
# One-time parameter preparation (hoisted out of the forward, per review):
# transpose PyTorch-layout weights to (in, out), cast MXU operands to bf16,
# reshape biases / LN params to (1, D) lane layout.
# ---------------------------------------------------------------------------

def prepare_params(params):
    kp = {
        "in_proj_w": params["in_proj_w"].T.astype(jnp.bfloat16),
        "in_proj_b": params["in_proj_b"].reshape(1, -1).astype(jnp.float32),
        "out_proj_w": params["out_proj_w"].T.astype(jnp.bfloat16),
        "out_proj_b": params["out_proj_b"].reshape(1, -1).astype(jnp.float32),
        "ln1_g": params["ln1_g"].reshape(1, -1).astype(jnp.float32),
        "ln1_b": params["ln1_b"].reshape(1, -1).astype(jnp.float32),
    }
    if params.get("ff1_w") is not None:
        kp.update({
            "ff1_w": params["ff1_w"].T.astype(jnp.bfloat16),
            "ff1_b": params["ff1_b"].reshape(1, -1).astype(jnp.float32),
            "ff2_w": params["ff2_w"].T.astype(jnp.bfloat16),
            "ff2_b": params["ff2_b"].reshape(1, -1).astype(jnp.float32),
            "ln2_g": params["ln2_g"].reshape(1, -1).astype(jnp.float32),
            "ln2_b": params["ln2_b"].reshape(1, -1).astype(jnp.float32),
        })
    return kp


# ---------------------------------------------------------------------------
# Deterministic parameter init (PyTorch weight shapes, synthetic values)
# ---------------------------------------------------------------------------

def init_params(key, embed_dim, feedforward_dim):
    ks = jax.random.split(key, 8)
    E, F = embed_dim, feedforward_dim
    s = 0.05
    params = {
        "in_proj_w": s * jax.random.normal(ks[0], (3 * E, E), jnp.float32),
        "in_proj_b": s * jax.random.normal(ks[1], (3 * E,), jnp.float32),
        "out_proj_w": s * jax.random.normal(ks[2], (E, E), jnp.float32),
        "out_proj_b": s * jax.random.normal(ks[3], (E,), jnp.float32),
        "ln1_g": jnp.ones((E,), jnp.float32),
        "ln1_b": jnp.zeros((E,), jnp.float32),
    }
    if F is not None:
        params.update({
            "ff1_w": s * jax.random.normal(ks[4], (F, E), jnp.float32),
            "ff1_b": s * jax.random.normal(ks[5], (F,), jnp.float32),
            "ff2_w": s * jax.random.normal(ks[6], (E, F), jnp.float32),
            "ff2_b": s * jax.random.normal(ks[7], (E,), jnp.float32),
            "ln2_g": jnp.ones((E,), jnp.float32),
            "ln2_b": jnp.zeros((E,), jnp.float32),
        })
    return params


if __name__ == "__main__":
    seq_len, batch, embed_dim, num_heads, ff_dim = 8, 2, 32, 4, 64

    key = jax.random.PRNGKey(0)
    k_x, k_p = jax.random.split(key)
    x = jax.random.normal(k_x, (seq_len, batch, embed_dim), jnp.float32)
    params = init_params(k_p, embed_dim, ff_dim)
    kparams = prepare_params(params)   # one-time: transposed / bf16 weights

    fwd = jax.jit(functools.partial(attention_layer_forward,
                                    num_heads=num_heads))
    out = fwd(x, kparams)
    out = jax.block_until_ready(out)

    assert out.shape == (seq_len, batch, embed_dim)
    assert bool(jnp.all(jnp.isfinite(out)))
    print("KERNEL_OK")
</pallas_src>

<mosaic_0001>
module attributes {stable_mosaic.version = 11 : i64} {
  func.func @_fused_layer_kernel(%arg0: i32, %arg1: memref<1x8x32xf32, #tpu.memory_space<vmem>>, %arg2: memref<32x96xbf16, #tpu.memory_space<vmem>>, %arg3: memref<1x96xf32, #tpu.memory_space<vmem>>, %arg4: memref<32x32xbf16, #tpu.memory_space<vmem>>, %arg5: memref<1x32xf32, #tpu.memory_space<vmem>>, %arg6: memref<1x32xf32, #tpu.memory_space<vmem>>, %arg7: memref<1x32xf32, #tpu.memory_space<vmem>>, %arg8: memref<32x64xbf16, #tpu.memory_space<vmem>>, %arg9: memref<1x64xf32, #tpu.memory_space<vmem>>, %arg10: memref<64x32xbf16, #tpu.memory_space<vmem>>, %arg11: memref<1x32xf32, #tpu.memory_space<vmem>>, %arg12: memref<1x32xf32, #tpu.memory_space<vmem>>, %arg13: memref<1x32xf32, #tpu.memory_space<vmem>>, %arg14: memref<1x8x32xf32, #tpu.memory_space<vmem>>) attributes {dimension_semantics = [#tpu.dimension_semantics<parallel>], iteration_bounds = array<i64: 2>, scalar_prefetch = 0 : i64, scratch_operands = 0 : i64, tpu.core_type = #tpu.core_type<tc>, window_params = [{transform_indices = @transform_0, window_bounds = array<i64: 1, 8, 32>}, {pipeline_mode = #tpu.pipeline_mode<synchronous>, transform_indices = @transform_1, window_bounds = array<i64: 32, 96>}, {pipeline_mode = #tpu.pipeline_mode<synchronous>, transform_indices = @transform_2, window_bounds = array<i64: 1, 96>}, {pipeline_mode = #tpu.pipeline_mode<synchronous>, transform_indices = @transform_3, window_bounds = array<i64: 32, 32>}, {pipeline_mode = #tpu.pipeline_mode<synchronous>, transform_indices = @transform_4, window_bounds = array<i64: 1, 32>}, {pipeline_mode = #tpu.pipeline_mode<synchronous>, transform_indices = @transform_5, window_bounds = array<i64: 1, 32>}, {pipeline_mode = #tpu.pipeline_mode<synchronous>, transform_indices = @transform_6, window_bounds = array<i64: 1, 32>}, {pipeline_mode = #tpu.pipeline_mode<synchronous>, transform_indices = @transform_7, window_bounds = array<i64: 32, 64>}, {pipeline_mode = #tpu.pipeline_mode<synchronous>, transform_indices = @transform_8, window_bounds = array<i64: 1, 64>}, {pipeline_mode = #tpu.pipeline_mode<synchronous>, transform_indices = @transform_9, window_bounds = array<i64: 64, 32>}, {pipeline_mode = #tpu.pipeline_mode<synchronous>, transform_indices = @transform_10, window_bounds = array<i64: 1, 32>}, {pipeline_mode = #tpu.pipeline_mode<synchronous>, transform_indices = @transform_11, window_bounds = array<i64: 1, 32>}, {pipeline_mode = #tpu.pipeline_mode<synchronous>, transform_indices = @transform_12, window_bounds = array<i64: 1, 32>}, {transform_indices = @transform_13, window_bounds = array<i64: 1, 8, 32>}]} {
    %c0 = arith.constant 0 : index
    %c0_0 = arith.constant 0 : index
    %c0_1 = arith.constant 0 : index
    %0 = vector.load %arg1[%c0, %c0_0, %c0_1] : memref<1x8x32xf32, #tpu.memory_space<vmem>>, vector<1x8x32xf32>
    %1 = vector.shape_cast %0 : vector<1x8x32xf32> to vector<8x32xf32>
    %2 = arith.truncf %1 : vector<8x32xf32> to vector<8x32xbf16>
    %c0_2 = arith.constant 0 : index
    %c0_3 = arith.constant 0 : index
    %3 = vector.load %arg2[%c0_2, %c0_3] : memref<32x96xbf16, #tpu.memory_space<vmem>>, vector<32x96xbf16>
    %cst = arith.constant dense<0.000000e+00> : vector<8x96xf32>
    %4 = tpu.matmul %2, %3, %cst {dimension_numbers = #tpu.dot_dimension_numbers<[1], [0], [0], [1], [0, 0, 1, 1], [], []>} : vector<8x32xbf16>, vector<32x96xbf16>, vector<8x96xf32> -> vector<8x96xf32>
    %c0_4 = arith.constant 0 : index
    %c0_5 = arith.constant 0 : index
    %5 = vector.load %arg3[%c0_4, %c0_5] : memref<1x96xf32, #tpu.memory_space<vmem>>, vector<1x96xf32>
    %6 = vector.broadcast %5 : vector<1x96xf32> to vector<8x96xf32>
    %7 = arith.addf %4, %6 : vector<8x96xf32>
    %8 = vector.extract_strided_slice %7 {offsets = [0, 0], sizes = [8, 32], strides = [1, 1]} : vector<8x96xf32> to vector<8x32xf32>
    %9 = vector.extract_strided_slice %7 {offsets = [0, 32], sizes = [8, 32], strides = [1, 1]} : vector<8x96xf32> to vector<8x32xf32>
    %10 = vector.extract_strided_slice %7 {offsets = [0, 64], sizes = [8, 32], strides = [1, 1]} : vector<8x96xf32> to vector<8x32xf32>
    %11 = vector.extract_strided_slice %8 {offsets = [0, 0], sizes = [8, 8], strides = [1, 1]} : vector<8x32xf32> to vector<8x8xf32>
    %12 = arith.truncf %11 : vector<8x8xf32> to vector<8x8xbf16>
    %13 = vector.extract_strided_slice %9 {offsets = [0, 0], sizes = [8, 8], strides = [1, 1]} : vector<8x32xf32> to vector<8x8xf32>
    %14 = arith.truncf %13 : vector<8x8xf32> to vector<8x8xbf16>
    %15 = vector.extract_strided_slice %10 {offsets = [0, 0], sizes = [8, 8], strides = [1, 1]} : vector<8x32xf32> to vector<8x8xf32>
    %16 = arith.truncf %15 : vector<8x8xf32> to vector<8x8xbf16>
    %cst_6 = arith.constant dense<0.000000e+00> : vector<8x8xf32>
    %17 = tpu.matmul %12, %14, %cst_6 {dimension_numbers = #tpu.dot_dimension_numbers<[1], [1], [0], [0], [0, 0, 1, 0], [], []>} : vector<8x8xbf16>, vector<8x8xbf16>, vector<8x8xf32> -> vector<8x8xf32>
    %cst_7 = arith.constant 0.353553385 : f32
    %18 = vector.broadcast %cst_7 : f32 to vector<8x8xf32>
    %19 = arith.mulf %17, %18 : vector<8x8xf32>
    %cst_8 = arith.constant dense<0xFF800000> : vector<8xf32>
    %20 = vector.multi_reduction <maximumf>, %19, %cst_8 [1] : vector<8x8xf32> to vector<8xf32>
    %21 = vector.shape_cast %20 : vector<8xf32> to vector<8x1xf32>
    %22 = vector.broadcast %21 : vector<8x1xf32> to vector<8x8xf32>
    %23 = arith.subf %19, %22 : vector<8x8xf32>
    %24 = math.exp %23 : vector<8x8xf32>
    %cst_9 = arith.constant dense<0.000000e+00> : vector<8xf32>
    %25 = vector.multi_reduction <add>, %24, %cst_9 [1] : vector<8x8xf32> to vector<8xf32>
    %26 = vector.shape_cast %25 : vector<8xf32> to vector<8x1xf32>
    %27 = tpu.reciprocal %26 {approx = true} : vector<8x1xf32> -> vector<8x1xf32>
    %28 = vector.broadcast %27 : vector<8x1xf32> to vector<8x8xf32>
    %29 = arith.mulf %24, %28 : vector<8x8xf32>
    %30 = arith.truncf %29 : vector<8x8xf32> to vector<8x8xbf16>
    %cst_10 = arith.constant dense<0.000000e+00> : vector<8x8xf32>
    %31 = tpu.matmul %30, %16, %cst_10 {dimension_numbers = #tpu.dot_dimension_numbers<[1], [0], [0], [1], [0, 0, 1, 1], [], []>} : vector<8x8xbf16>, vector<8x8xbf16>, vector<8x8xf32> -> vector<8x8xf32>
    %32 = vector.extract_strided_slice %8 {offsets = [0, 8], sizes = [8, 8], strides = [1, 1]} : vector<8x32xf32> to vector<8x8xf32>
    %33 = arith.truncf %32 : vector<8x8xf32> to vector<8x8xbf16>
    %34 = vector.extract_strided_slice %9 {offsets = [0, 8], sizes = [8, 8], strides = [1, 1]} : vector<8x32xf32> to vector<8x8xf32>
    %35 = arith.truncf %34 : vector<8x8xf32> to vector<8x8xbf16>
    %36 = vector.extract_strided_slice %10 {offsets = [0, 8], sizes = [8, 8], strides = [1, 1]} : vector<8x32xf32> to vector<8x8xf32>
    %37 = arith.truncf %36 : vector<8x8xf32> to vector<8x8xbf16>
    %cst_11 = arith.constant dense<0.000000e+00> : vector<8x8xf32>
    %38 = tpu.matmul %33, %35, %cst_11 {dimension_numbers = #tpu.dot_dimension_numbers<[1], [1], [0], [0], [0, 0, 1, 0], [], []>} : vector<8x8xbf16>, vector<8x8xbf16>, vector<8x8xf32> -> vector<8x8xf32>
    %cst_12 = arith.constant 0.353553385 : f32
    %39 = vector.broadcast %cst_12 : f32 to vector<8x8xf32>
    %40 = arith.mulf %38, %39 : vector<8x8xf32>
    %cst_13 = arith.constant dense<0xFF800000> : vector<8xf32>
    %41 = vector.multi_reduction <maximumf>, %40, %cst_13 [1] : vector<8x8xf32> to vector<8xf32>
    %42 = vector.shape_cast %41 : vector<8xf32> to vector<8x1xf32>
    %43 = vector.broadcast %42 : vector<8x1xf32> to vector<8x8xf32>
    %44 = arith.subf %40, %43 : vector<8x8xf32>
    %45 = math.exp %44 : vector<8x8xf32>
    %cst_14 = arith.constant dense<0.000000e+00> : vector<8xf32>
    %46 = vector.multi_reduction <add>, %45, %cst_14 [1] : vector<8x8xf32> to vector<8xf32>
    %47 = vector.shape_cast %46 : vector<8xf32> to vector<8x1xf32>
    %48 = tpu.reciprocal %47 {approx = true} : vector<8x1xf32> -> vector<8x1xf32>
    %49 = vector.broadcast %48 : vector<8x1xf32> to vector<8x8xf32>
    %50 = arith.mulf %45, %49 : vector<8x8xf32>
    %51 = arith.truncf %50 : vector<8x8xf32> to vector<8x8xbf16>
    %cst_15 = arith.constant dense<0.000000e+00> : vector<8x8xf32>
    %52 = tpu.matmul %51, %37, %cst_15 {dimension_numbers = #tpu.dot_dimension_numbers<[1], [0], [0], [1], [0, 0, 1, 1], [], []>} : vector<8x8xbf16>, vector<8x8xbf16>, vector<8x8xf32> -> vector<8x8xf32>
    %53 = vector.extract_strided_slice %8 {offsets = [0, 16], sizes = [8, 8], strides = [1, 1]} : vector<8x32xf32> to vector<8x8xf32>
    %54 = arith.truncf %53 : vector<8x8xf32> to vector<8x8xbf16>
    %55 = vector.extract_strided_slice %9 {offsets = [0, 16], sizes = [8, 8], strides = [1, 1]} : vector<8x32xf32> to vector<8x8xf32>
    %56 = arith.truncf %55 : vector<8x8xf32> to vector<8x8xbf16>
    %57 = vector.extract_strided_slice %10 {offsets = [0, 16], sizes = [8, 8], strides = [1, 1]} : vector<8x32xf32> to vector<8x8xf32>
    %58 = arith.truncf %57 : vector<8x8xf32> to vector<8x8xbf16>
    %cst_16 = arith.constant dense<0.000000e+00> : vector<8x8xf32>
    %59 = tpu.matmul %54, %56, %cst_16 {dimension_numbers = #tpu.dot_dimension_numbers<[1], [1], [0], [0], [0, 0, 1, 0], [], []>} : vector<8x8xbf16>, vector<8x8xbf16>, vector<8x8xf32> -> vector<8x8xf32>
    %cst_17 = arith.constant 0.353553385 : f32
    %60 = vector.broadcast %cst_17 : f32 to vector<8x8xf32>
    %61 = arith.mulf %59, %60 : vector<8x8xf32>
    %cst_18 = arith.constant dense<0xFF800000> : vector<8xf32>
    %62 = vector.multi_reduction <maximumf>, %61, %cst_18 [1] : vector<8x8xf32> to vector<8xf32>
    %63 = vector.shape_cast %62 : vector<8xf32> to vector<8x1xf32>
    %64 = vector.broadcast %63 : vector<8x1xf32> to vector<8x8xf32>
    %65 = arith.subf %61, %64 : vector<8x8xf32>
    %66 = math.exp %65 : vector<8x8xf32>
    %cst_19 = arith.constant dense<0.000000e+00> : vector<8xf32>
    %67 = vector.multi_reduction <add>, %66, %cst_19 [1] : vector<8x8xf32> to vector<8xf32>
    %68 = vector.shape_cast %67 : vector<8xf32> to vector<8x1xf32>
    %69 = tpu.reciprocal %68 {approx = true} : vector<8x1xf32> -> vector<8x1xf32>
    %70 = vector.broadcast %69 : vector<8x1xf32> to vector<8x8xf32>
    %71 = arith.mulf %66, %70 : vector<8x8xf32>
    %72 = arith.truncf %71 : vector<8x8xf32> to vector<8x8xbf16>
    %cst_20 = arith.constant dense<0.000000e+00> : vector<8x8xf32>
    %73 = tpu.matmul %72, %58, %cst_20 {dimension_numbers = #tpu.dot_dimension_numbers<[1], [0], [0], [1], [0, 0, 1, 1], [], []>} : vector<8x8xbf16>, vector<8x8xbf16>, vector<8x8xf32> -> vector<8x8xf32>
    %74 = vector.extract_strided_slice %8 {offsets = [0, 24], sizes = [8, 8], strides = [1, 1]} : vector<8x32xf32> to vector<8x8xf32>
    %75 = arith.truncf %74 : vector<8x8xf32> to vector<8x8xbf16>
    %76 = vector.extract_strided_slice %9 {offsets = [0, 24], sizes = [8, 8], strides = [1, 1]} : vector<8x32xf32> to vector<8x8xf32>
    %77 = arith.truncf %76 : vector<8x8xf32> to vector<8x8xbf16>
    %78 = vector.extract_strided_slice %10 {offsets = [0, 24], sizes = [8, 8], strides = [1, 1]} : vector<8x32xf32> to vector<8x8xf32>
    %79 = arith.truncf %78 : vector<8x8xf32> to vector<8x8xbf16>
    %cst_21 = arith.constant dense<0.000000e+00> : vector<8x8xf32>
    %80 = tpu.matmul %75, %77, %cst_21 {dimension_numbers = #tpu.dot_dimension_numbers<[1], [1], [0], [0], [0, 0, 1, 0], [], []>} : vector<8x8xbf16>, vector<8x8xbf16>, vector<8x8xf32> -> vector<8x8xf32>
    %cst_22 = arith.constant 0.353553385 : f32
    %81 = vector.broadcast %cst_22 : f32 to vector<8x8xf32>
    %82 = arith.mulf %80, %81 : vector<8x8xf32>
    %cst_23 = arith.constant dense<0xFF800000> : vector<8xf32>
    %83 = vector.multi_reduction <maximumf>, %82, %cst_23 [1] : vector<8x8xf32> to vector<8xf32>
    %84 = vector.shape_cast %83 : vector<8xf32> to vector<8x1xf32>
    %85 = vector.broadcast %84 : vector<8x1xf32> to vector<8x8xf32>
    %86 = arith.subf %82, %85 : vector<8x8xf32>
    %87 = math.exp %86 : vector<8x8xf32>
    %cst_24 = arith.constant dense<0.000000e+00> : vector<8xf32>
    %88 = vector.multi_reduction <add>, %87, %cst_24 [1] : vector<8x8xf32> to vector<8xf32>
    %89 = vector.shape_cast %88 : vector<8xf32> to vector<8x1xf32>
    %90 = tpu.reciprocal %89 {approx = true} : vector<8x1xf32> -> vector<8x1xf32>
    %91 = vector.broadcast %90 : vector<8x1xf32> to vector<8x8xf32>
    %92 = arith.mulf %87, %91 : vector<8x8xf32>
    %93 = arith.truncf %92 : vector<8x8xf32> to vector<8x8xbf16>
    %cst_25 = arith.constant dense<0.000000e+00> : vector<8x8xf32>
    %94 = tpu.matmul %93, %79, %cst_25 {dimension_numbers = #tpu.dot_dimension_numbers<[1], [0], [0], [1], [0, 0, 1, 1], [], []>} : vector<8x8xbf16>, vector<8x8xbf16>, vector<8x8xf32> -> vector<8x8xf32>
    %95 = tpu.concatenate %31, %52, %73, %94 in 1 : vector<8x8xf32>, vector<8x8xf32>, vector<8x8xf32>, vector<8x8xf32> -> vector<8x32xf32>
    %96 = arith.truncf %95 : vector<8x32xf32> to vector<8x32xbf16>
    %c0_26 = arith.constant 0 : index
    %c0_27 = arith.constant 0 : index
    %97 = vector.load %arg4[%c0_26, %c0_27] : memref<32x32xbf16, #tpu.memory_space<vmem>>, vector<32x32xbf16>
    %cst_28 = arith.constant dense<0.000000e+00> : vector<8x32xf32>
    %98 = tpu.matmul %96, %97, %cst_28 {dimension_numbers = #tpu.dot_dimension_numbers<[1], [0], [0], [1], [0, 0, 1, 1], [], []>} : vector<8x32xbf16>, vector<32x32xbf16>, vector<8x32xf32> -> vector<8x32xf32>
    %c0_29 = arith.constant 0 : index
    %c0_30 = arith.constant 0 : index
    %99 = vector.load %arg5[%c0_29, %c0_30] : memref<1x32xf32, #tpu.memory_space<vmem>>, vector<1x32xf32>
    %100 = vector.broadcast %99 : vector<1x32xf32> to vector<8x32xf32>
    %101 = arith.addf %98, %100 : vector<8x32xf32>
    %102 = arith.addf %1, %101 : vector<8x32xf32>
    %cst_31 = arith.constant dense<0.000000e+00> : vector<8xf32>
    %103 = vector.multi_reduction <add>, %102, %cst_31 [1] : vector<8x32xf32> to vector<8xf32>
    %104 = vector.shape_cast %103 : vector<8xf32> to vector<8x1xf32>
    %cst_32 = arith.constant 3.200000e+01 : f32
    %105 = vector.broadcast %cst_32 : f32 to vector<8x1xf32>
    %106 = arith.divf %104, %105 : vector<8x1xf32>
    %107 = vector.broadcast %106 : vector<8x1xf32> to vector<8x32xf32>
    %108 = arith.subf %102, %107 : vector<8x32xf32>
    %109 = arith.mulf %108, %108 : vector<8x32xf32>
    %cst_33 = arith.constant dense<0.000000e+00> : vector<8xf32>
    %110 = vector.multi_reduction <add>, %109, %cst_33 [1] : vector<8x32xf32> to vector<8xf32>
    %111 = vector.shape_cast %110 : vector<8xf32> to vector<8x1xf32>
    %cst_34 = arith.constant 3.200000e+01 : f32
    %112 = vector.broadcast %cst_34 : f32 to vector<8x1xf32>
    %113 = arith.divf %111, %112 : vector<8x1xf32>
    %114 = vector.broadcast %106 : vector<8x1xf32> to vector<8x32xf32>
    %115 = arith.subf %102, %114 : vector<8x32xf32>
    %cst_35 = arith.constant 9.99999974E-6 : f32
    %116 = vector.broadcast %cst_35 : f32 to vector<8x1xf32>
    %117 = arith.addf %113, %116 : vector<8x1xf32>
    %118 = math.rsqrt %117 : vector<8x1xf32>
    %119 = vector.broadcast %118 : vector<8x1xf32> to vector<8x32xf32>
    %120 = arith.mulf %115, %119 : vector<8x32xf32>
    %c0_36 = arith.constant 0 : index
    %c0_37 = arith.constant 0 : index
    %121 = vector.load %arg6[%c0_36, %c0_37] : memref<1x32xf32, #tpu.memory_space<vmem>>, vector<1x32xf32>
    %122 = vector.broadcast %121 : vector<1x32xf32> to vector<8x32xf32>
    %123 = arith.mulf %120, %122 : vector<8x32xf32>
    %c0_38 = arith.constant 0 : index
    %c0_39 = arith.constant 0 : index
    %124 = vector.load %arg7[%c0_38, %c0_39] : memref<1x32xf32, #tpu.memory_space<vmem>>, vector<1x32xf32>
    %125 = vector.broadcast %124 : vector<1x32xf32> to vector<8x32xf32>
    %126 = arith.addf %123, %125 : vector<8x32xf32>
    %127 = arith.truncf %126 : vector<8x32xf32> to vector<8x32xbf16>
    %c0_40 = arith.constant 0 : index
    %c0_41 = arith.constant 0 : index
    %128 = vector.load %arg8[%c0_40, %c0_41] : memref<32x64xbf16, #tpu.memory_space<vmem>>, vector<32x64xbf16>
    %cst_42 = arith.constant dense<0.000000e+00> : vector<8x64xf32>
    %129 = tpu.matmul %127, %128, %cst_42 {dimension_numbers = #tpu.dot_dimension_numbers<[1], [0], [0], [1], [0, 0, 1, 1], [], []>} : vector<8x32xbf16>, vector<32x64xbf16>, vector<8x64xf32> -> vector<8x64xf32>
    %c0_43 = arith.constant 0 : index
    %c0_44 = arith.constant 0 : index
    %130 = vector.load %arg9[%c0_43, %c0_44] : memref<1x64xf32, #tpu.memory_space<vmem>>, vector<1x64xf32>
    %131 = vector.broadcast %130 : vector<1x64xf32> to vector<8x64xf32>
    %132 = arith.addf %129, %131 : vector<8x64xf32>
    %cst_45 = arith.constant 0.000000e+00 : f32
    %133 = vector.broadcast %cst_45 : f32 to vector<8x64xf32>
    %134 = arith.maximumf %132, %133 : vector<8x64xf32>
    %135 = arith.truncf %134 : vector<8x64xf32> to vector<8x64xbf16>
    %c0_46 = arith.constant 0 : index
    %c0_47 = arith.constant 0 : index
    %136 = vector.load %arg10[%c0_46, %c0_47] : memref<64x32xbf16, #tpu.memory_space<vmem>>, vector<64x32xbf16>
    %cst_48 = arith.constant dense<0.000000e+00> : vector<8x32xf32>
    %137 = tpu.matmul %135, %136, %cst_48 {dimension_numbers = #tpu.dot_dimension_numbers<[1], [0], [0], [1], [0, 0, 1, 1], [], []>} : vector<8x64xbf16>, vector<64x32xbf16>, vector<8x32xf32> -> vector<8x32xf32>
    %c0_49 = arith.constant 0 : index
    %c0_50 = arith.constant 0 : index
    %138 = vector.load %arg11[%c0_49, %c0_50] : memref<1x32xf32, #tpu.memory_space<vmem>>, vector<1x32xf32>
    %139 = vector.broadcast %138 : vector<1x32xf32> to vector<8x32xf32>
    %140 = arith.addf %137, %139 : vector<8x32xf32>
    %141 = arith.addf %126, %140 : vector<8x32xf32>
    %cst_51 = arith.constant dense<0.000000e+00> : vector<8xf32>
    %142 = vector.multi_reduction <add>, %141, %cst_51 [1] : vector<8x32xf32> to vector<8xf32>
    %143 = vector.shape_cast %142 : vector<8xf32> to vector<8x1xf32>
    %cst_52 = arith.constant 3.200000e+01 : f32
    %144 = vector.broadcast %cst_52 : f32 to vector<8x1xf32>
    %145 = arith.divf %143, %144 : vector<8x1xf32>
    %146 = vector.broadcast %145 : vector<8x1xf32> to vector<8x32xf32>
    %147 = arith.subf %141, %146 : vector<8x32xf32>
    %148 = arith.mulf %147, %147 : vector<8x32xf32>
    %cst_53 = arith.constant dense<0.000000e+00> : vector<8xf32>
    %149 = vector.multi_reduction <add>, %148, %cst_53 [1] : vector<8x32xf32> to vector<8xf32>
    %150 = vector.shape_cast %149 : vector<8xf32> to vector<8x1xf32>
    %cst_54 = arith.constant 3.200000e+01 : f32
    %151 = vector.broadcast %cst_54 : f32 to vector<8x1xf32>
    %152 = arith.divf %150, %151 : vector<8x1xf32>
    %153 = vector.broadcast %145 : vector<8x1xf32> to vector<8x32xf32>
    %154 = arith.subf %141, %153 : vector<8x32xf32>
    %cst_55 = arith.constant 9.99999974E-6 : f32
    %155 = vector.broadcast %cst_55 : f32 to vector<8x1xf32>
    %156 = arith.addf %152, %155 : vector<8x1xf32>
    %157 = math.rsqrt %156 : vector<8x1xf32>
    %158 = vector.broadcast %157 : vector<8x1xf32> to vector<8x32xf32>
    %159 = arith.mulf %154, %158 : vector<8x32xf32>
    %c0_56 = arith.constant 0 : index
    %c0_57 = arith.constant 0 : index
    %160 = vector.load %arg12[%c0_56, %c0_57] : memref<1x32xf32, #tpu.memory_space<vmem>>, vector<1x32xf32>
    %161 = vector.broadcast %160 : vector<1x32xf32> to vector<8x32xf32>
    %162 = arith.mulf %159, %161 : vector<8x32xf32>
    %c0_58 = arith.constant 0 : index
    %c0_59 = arith.constant 0 : index
    %163 = vector.load %arg13[%c0_58, %c0_59] : memref<1x32xf32, #tpu.memory_space<vmem>>, vector<1x32xf32>
    %164 = vector.broadcast %163 : vector<1x32xf32> to vector<8x32xf32>
    %165 = arith.addf %162, %164 : vector<8x32xf32>
    %c0_60 = arith.constant 0 : index
    %c0_61 = arith.constant 0 : index
    %c0_62 = arith.constant 0 : index
    %166 = vector.load %arg14[%c0_60, %c0_61, %c0_62] : memref<1x8x32xf32, #tpu.memory_space<vmem>>, vector<1x8x32xf32>
    %167 = vector.shape_cast %166 : vector<1x8x32xf32> to vector<8x32xf32>
    %168 = vector.shape_cast %165 : vector<8x32xf32> to vector<1x8x32xf32>
    tpu.vector_store %arg14[%c0_60, %c0_61, %c0_62], %168 {strides = array<i32>} : memref<1x8x32xf32, #tpu.memory_space<vmem>>, vector<1x8x32xf32>,
    return
  }
  func.func @transform_0(%arg0: i32) -> (i32, i32, i32) {
    %c0_i32 = arith.constant 0 : i32
    %c0_i32_0 = arith.constant 0 : i32
    %c0_i32_1 = arith.constant 0 : i32
    return %arg0, %c0_i32, %c0_i32_0 : i32, i32, i32
  }
  func.func @transform_1(%arg0: i32) -> (i32, i32) {
    %c0_i32 = arith.constant 0 : i32
    %c0_i32_0 = arith.constant 0 : i32
    %c0_i32_1 = arith.constant 0 : i32
    return %c0_i32, %c0_i32_0 : i32, i32
  }
  func.func @transform_2(%arg0: i32) -> (i32, i32) {
    %c0_i32 = arith.constant 0 : i32
    %c0_i32_0 = arith.constant 0 : i32
    %c0_i32_1 = arith.constant 0 : i32
    return %c0_i32, %c0_i32_0 : i32, i32
  }
  func.func @transform_3(%arg0: i32) -> (i32, i32) {
    %c0_i32 = arith.constant 0 : i32
    %c0_i32_0 = arith.constant 0 : i32
    %c0_i32_1 = arith.constant 0 : i32
    return %c0_i32, %c0_i32_0 : i32, i32
  }
  func.func @transform_4(%arg0: i32) -> (i32, i32) {
    %c0_i32 = arith.constant 0 : i32
    %c0_i32_0 = arith.constant 0 : i32
    %c0_i32_1 = arith.constant 0 : i32
    return %c0_i32, %c0_i32_0 : i32, i32
  }
  func.func @transform_5(%arg0: i32) -> (i32, i32) {
    %c0_i32 = arith.constant 0 : i32
    %c0_i32_0 = arith.constant 0 : i32
    %c0_i32_1 = arith.constant 0 : i32
    return %c0_i32, %c0_i32_0 : i32, i32
  }
  func.func @transform_6(%arg0: i32) -> (i32, i32) {
    %c0_i32 = arith.constant 0 : i32
    %c0_i32_0 = arith.constant 0 : i32
    %c0_i32_1 = arith.constant 0 : i32
    return %c0_i32, %c0_i32_0 : i32, i32
  }
  func.func @transform_7(%arg0: i32) -> (i32, i32) {
    %c0_i32 = arith.constant 0 : i32
    %c0_i32_0 = arith.constant 0 : i32
    %c0_i32_1 = arith.constant 0 : i32
    return %c0_i32, %c0_i32_0 : i32, i32
  }
  func.func @transform_8(%arg0: i32) -> (i32, i32) {
    %c0_i32 = arith.constant 0 : i32
    %c0_i32_0 = arith.constant 0 : i32
    %c0_i32_1 = arith.constant 0 : i32
    return %c0_i32, %c0_i32_0 : i32, i32
  }
  func.func @transform_9(%arg0: i32) -> (i32, i32) {
    %c0_i32 = arith.constant 0 : i32
    %c0_i32_0 = arith.constant 0 : i32
    %c0_i32_1 = arith.constant 0 : i32
    return %c0_i32, %c0_i32_0 : i32, i32
  }
  func.func @transform_10(%arg0: i32) -> (i32, i32) {
    %c0_i32 = arith.constant 0 : i32
    %c0_i32_0 = arith.constant 0 : i32
    %c0_i32_1 = arith.constant 0 : i32
    return %c0_i32, %c0_i32_0 : i32, i32
  }
  func.func @transform_11(%arg0: i32) -> (i32, i32) {
    %c0_i32 = arith.constant 0 : i32
    %c0_i32_0 = arith.constant 0 : i32
    %c0_i32_1 = arith.constant 0 : i32
    return %c0_i32, %c0_i32_0 : i32, i32
  }
  func.func @transform_12(%arg0: i32) -> (i32, i32) {
    %c0_i32 = arith.constant 0 : i32
    %c0_i32_0 = arith.constant 0 : i32
    %c0_i32_1 = arith.constant 0 : i32
    return %c0_i32, %c0_i32_0 : i32, i32
  }
  func.func @transform_13(%arg0: i32) -> (i32, i32, i32) {
    %c0_i32 = arith.constant 0 : i32
    %c0_i32_0 = arith.constant 0 : i32
    %c0_i32_1 = arith.constant 0 : i32
    return %arg0, %c0_i32, %c0_i32_0 : i32, i32, i32
  }
}

</mosaic_0001>

<bundles_post_ra>
// kernel: attention_layer_forward.1
= control target key start
LH: loop header
LB: loop body
LE: loop exit
PB: predicated region body
PF: predicated region fallthrough
CT: control target
= control target key end

     0   :  { %s1196_s25 = smov 0   ;;  %s1326_s0 = inlined_call_operand.vmem [shape: f32[2,8,32], index: 0, kind: input, shape index: {}]   ;;  %s1327_s1 = inlined_call_operand.vmem [shape: bf16[32,96], index: 1, kind: input, shape index: {}]   ;;  %s1328_s2 = inlined_call_operand.vmem [shape: f32[1,96], index: 2, kind: input, shape index: {}]   ;;  %s1329_s3 = inlined_call_operand.vmem [shape: bf16[32,32], index: 3, kind: input, shape index: {}]   ;;  %s1330_s4 = inlined_call_operand.vmem [shape: f32[1,32], index: 4, kind: input, shape index: {}]   ;;  %s1331_s5 = inlined_call_operand.vmem [shape: f32[1,32], index: 5, kind: input, shape index: {}]   ;;  %s1332_s6 = inlined_call_operand.vmem [shape: f32[1,32], index: 6, kind: input, shape index: {}]   ;;  %s1333_s7 = inlined_call_operand.vmem [shape: bf16[32,64], index: 7, kind: input, shape index: {}]   ;;  %s1334_s8 = inlined_call_operand.vmem [shape: f32[1,64], index: 8, kind: input, shape index: {}]   ;;  %s1335_s9 = inlined_call_operand.vmem [shape: bf16[64,32], index: 9, kind: input, shape index: {}]   ;;  %s1336_s10 = inlined_call_operand.vmem [shape: f32[1,32], index: 10, kind: input, shape index: {}]   ;;  %s1337_s11 = inlined_call_operand.vmem [shape: f32[1,32], index: 11, kind: input, shape index: {}]   ;;  %s1338_s12 = inlined_call_operand.vmem [shape: f32[1,32], index: 12, kind: input, shape index: {}]   ;;  %s1339_s13 = inlined_call_operand.vmem [shape: f32[2,8,32], index: 13, kind: output, shape index: {}]  }
   0x1 LB: > { %s979_s26 = sadd.s32 4294967295, %s1109_s25   ;;  %p983_p0 = scmp.ge.s32.totalorder %s1109_s25, 1  ;;  %s1109_s25 = sphi %s1196_s25, %s23_s25  }
   0x2   : > { %p386_p1 = scmp.lt.s32.totalorder %s1109_s25, 3 }
   0x4   : > { %p387_p2 = pnand %p983_p0, %p386_p1 }
   0x5   : > { %p428_p3 = scmp.lt.s32.totalorder (!%p387_p2), %s979_s26, 1  ;;  %s1111_s20 = smov (!%p387_p2), 104  }
   0x6   : > { %390 = sbr.rel (%p387_p2) target bundleno = 1890 (0x762), region = 72  ;;  %s1112_s21 = smov (!%p387_p2), 120  }
   0x7   : > { %s1113_s22 = smov (!%p387_p2), 96   ;;  %s1114_s23 = smov (!%p387_p2), 80  }
   0x8   : > { %s1115_s24 = smov (!%p387_p2), 72   ;;  %s1116_s27 = smov (!%p387_p2), 88  }
   0x9   : > { %s1117_s28 = smov (!%p387_p2), 112   ;;  %s1118_s29 = smov (!%p387_p2), 64  }
   0xa   : > { %s1119_s30 = smov (!%p387_p2), 40   ;;  %s1120_s15 = smov (!%p387_p2), 56  }
   0xb   : > { %v1041_v0 = vld [vmem:[%s1327_s1 + $0x8] sm:$0xff]  ;;  %v1040_v1 = vld [vmem:[%s1327_s1] sm:$0xff]  ;;  %s1341_s26 = smov (!%p428_p3, %s979_s26), 1  ;;  %vm459_vm0 = vcmask 261120   ;;  %vm480_vm1 = vcmask 64512   ;;  %vm518_vm2 = vcmask 1043456  }
   0xc   : > { %469 = vmatpush.bf16.msra.mxu0 %v1041_v0  ;;  %s984_s14 = sshll.u32 %s1341_s26, 3  ;;  %v1073_v4 = vld [vmem:[%s1328_s2] ss:$0 sm:$0xff]  ;;  %s1121_s16 = smov 48   ;;  %vm719_vm3 = vcmask 130048   ;;  %vm721_vm4 = vcmask 195584  }
   0xd   : > { %s431_s17 = scalar_lea.vmem %s1326_s0, %s984_s14  ;;  %s1123_s18 = smov 16   ;;  %vm875_vm9 = vcmask 523264  }
   0xe   : > { %v1218_v2 = vld [vmem:[%s431_s17] sm:$0xff]  ;;  %s1122_s17 = smov 8   ;;  %s1124_s19 = smov 24  }
   0xf   : > { %v438_v3 = vpack.c.bf16 %v1218_v2, %v1218_v2 }
  0x10   : > { %470 = vmatpush.bf16.msra.mxu0 %v1040_v1 }
  0x13   : > { %994 = vmatmul.msk.bf16.vlgmr.msra.gmra.mxu0 %vm459_vm0, %v438_v3 }
  0x90   : > { %v472_v5 = vpop.f32.mrf.mxu0 }
  0x91   : > { %v473_v6 = vadd.f32 %v1073_v4, %v472_v5 }
  0x93   : > { %v1226_v7 = vpack.c.bf16 %v473_v6, %v473_v6 }
  0x95   : > { %649 = vrot.lane.b32.xlu2 %v1226_v7, %s1111_s20  ;;  %535 = vrot.lane.b32.xlu1 %v1226_v7, %s1112_s21 }
  0x96   : > { %478 = vrot.lane.b32.xlu0 %v1226_v7, %s1113_s22 }
  0x98   : > { %v474_v8 = vpop.f32.mrf.mxu0 }
  0x9d   : > { %594 = vrot.lane.b32.xlu2 %v1226_v7, %s1114_s23  ;;  %651 = vrot.lane.b32.xlu1 %v1226_v7, %s1115_s24  ;;  %s435_s24 = scalar_lea.vmem %s1339_s13, %s984_s14 }
  0x9e   : > { %537 = vrot.lane.b32.xlu0 %v1226_v7, %s1116_s27 }
  0xa6   : > { %592 = vrot.lane.b32.xlu0 %v1226_v7, %s1117_s28 }
  0xef   : > { %v650_v9 = vpop.permute.xlu2 %649 }
  0xf7   : > { %v595_v10 = vpop.permute.xlu2 %594 }
  0xf8   : > { %v600_v11 = vsel %vm480_vm1, %v595_v10, 0 }
  0xf9   : > { %609 = vmatpush.bf16.xpose.msrb.mxu0 %v600_v11 }
 0x107   : > { %v536_v12 = vpop.permute.xlu1 %535 }
 0x108   : > { %v479_v13 = vpop.permute.xlu0 %478 }
 0x109   : > { %v485_v14 = vsel %vm480_vm1, %v479_v13, 0 }
 0x10a   : > { %494 = vmatpush.bf16.xpose.msra.mxu1 %v485_v14 }
 0x10f   : > { %v652_v15 = vpop.permute.xlu1 %651 }
 0x110   : > { %v538_v16 = vpop.permute.xlu0 %537  ;;  %v657_v17 = vsel %vm480_vm1, %v652_v15, 0 }
 0x111   : > { %995 = vmatmul.msk.bf16.vlgmr.msra.gmra.mxu1 %vm480_vm1, %v1226_v7  ;;  %v543_v18 = vsel %vm480_vm1, %v538_v16, 0 }
 0x112   : > { %552 = vmatpush.bf16.xpose.msra.mxu3 %v543_v18 }
 0x118   : > { %v593_v19 = vpop.permute.xlu0 %592 }
 0x119   : > { %997 = vmatmul.msk.bf16.vlgmr.msra.gmra.mxu3 %vm480_vm1, %v536_v12  ;;  %999 = vmatmul.msk.bf16.vlgmr.msrb.gmra.mxu0 %vm480_vm1, %v593_v19 }
 0x11a   : > { %666 = vmatpush.bf16.xpose.msrb.mxu3 %v657_v17 }
 0x129   : > { %1001 = vmatmul.msk.bf16.vlgmr.msrb.gmra.mxu3 %vm480_vm1, %v650_v9 }
 0x18e   : > { %v496_v20 = vpop.f32.mrf.mxu1 }
 0x18f   : > { %v500_v21 = vmul.f32 0.35355338, %v496_v20 }
 0x191   : > { %v501_v22 = vsel %vm480_vm1, %v500_v21, -inf }
 0x192   : > { %502 = vmax.xlane.f32.xlu1 %v501_v22 }
 0x196   : > { %v498_v23 = vpop.f32.mrf.mxu1  ;;  %v611_v24 = vpop.f32.mrf.mxu0 }
 0x197   : > { %v615_v29 = vmul.f32 0.35355338, %v611_v24 }
 0x199   : > { %v616_v31 = vsel %vm480_vm1, %v615_v29, -inf }
 0x19c   : > { %v554_v25 = vpop.f32.mrf.mxu3 }
 0x19d   : > { %v558_v26 = vmul.f32 0.35355338, %v554_v25  ;;  %v1043_v25 = vld [vmem:[%s1329_s3 + $0x8] sm:$0xff] }
 0x19e   : > { %v613_v27 = vpop.f32.mrf.mxu0  ;;  %753 = vmatpush.bf16.msra.mxu0 %v1043_v25 }
 0x19f   : > { %v559_v28 = vsel %vm480_vm1, %v558_v26, -inf }
 0x1a0   : > { %560 = vmax.xlane.f32.xlu2 %v559_v28 }
 0x1a4   : > { %v556_v30 = vpop.f32.mrf.mxu3 }
 0x1a8   : > { %617 = vmax.xlane.f32.xlu2 %v616_v31 }
 0x1ac   : > { %v668_v32 = vpop.f32.mrf.mxu3 }
 0x1ad   : > { %v672_v33 = vmul.f32 0.35355338, %v668_v32 }
 0x1af   : > { %v673_v34 = vsel %vm480_vm1, %v672_v33, -inf }
 0x1b0   : > { %674 = vmax.xlane.f32.xlu0 %v673_v34  ;;  %v1074_v34 = vld [vmem:[%s1330_s4] ss:$0 sm:$0xff] }
 0x1b4   : > { %v670_v35 = vpop.f32.mrf.mxu3 }
 0x1c0   : > { %513 = vrot.lane.b32.xlu2 %v1226_v7, %s1118_s29 }
 0x1c8   : > { %685 = vrot.lane.b32.xlu2 %v1226_v7, %s1119_s30 }
 0x205   : > { %v503_v36 = vpop.xlane.xlu1 %502 }
 0x206   : > { %v504_v37 = vsub.f32 %v500_v21, %v503_v36 }
 0x208   : > { %v505_v38 = vmul.f32 1.442695, %v504_v37 }
 0x20a   : > { %1081 = vpow2.f32 %v505_v38 }
 0x210   : > { %v1082_v39 = vpop.eup %1081 }
 0x211   : > { %v507_v40 = vsel %vm480_vm1, %v1082_v39, 0.0 }
 0x212   : > { %508 = vadd.xlane.f32.xlu1 %v507_v40  ;;  %v1125_v40 = vmov 32.0  }
 0x213   : > { %v561_v41 = vpop.xlane.xlu2 %560 }
 0x214   : > { %v562_v44 = vsub.f32 %v558_v26, %v561_v41  ;;  %v1042_v26 = vld [vmem:[%s1329_s3] sm:$0xff] }
 0x215   : > { %754 = vmatpush.bf16.msra.mxu0 %v1042_v26 }
 0x216   : > { %v563_v46 = vmul.f32 1.442695, %v562_v44 }
 0x21b   : > { %v618_v42 = vpop.xlane.xlu2 %617 }
 0x21c   : > { %v619_v43 = vsub.f32 %v615_v29, %v618_v42 }
 0x21e   : > { %v620_v45 = vmul.f32 1.442695, %v619_v43 }
 0x220   : > { %1083 = vpow2.f32 %v620_v45 }
 0x221   : > { %1085 = vpow2.f32 %v563_v46 }
 0x223   : > { %v514_v47 = vpop.permute.xlu2 %513  ;;  %v675_v48 = vpop.xlane.xlu0 %674 }
 0x224   : > { %v520_v49 = vsel %vm518_vm2, %v514_v47, 0  ;;  %v676_v51 = vsub.f32 %v672_v33, %v675_v48 }
 0x225   : > { %529 = vmatpush.bf16.msra.mxu2 %v520_v49 }
 0x226   : > { %v1084_v50 = vpop.eup %1083  ;;  %v677_v53 = vmul.f32 1.442695, %v676_v51 }
 0x227   : > { %v622_v52 = vsel %vm480_vm1, %v1084_v50, 0.0  ;;  %v1086_v54 = vpop.eup %1085 }
 0x228   : > { %623 = vadd.xlane.f32.xlu0 %v622_v52  ;;  %1087 = vpow2.f32 %v677_v53  ;;  %v565_v55 = vsel %vm480_vm1, %v1086_v54, 0.0  ;;  %v1044_v52 = vld [vmem:[%s1333_s7] sm:$0xff]  ;;  %v1049_v53 = vld [vmem:[%s1335_s9 + $0x18] sm:$0xff] }
 0x229   : > { %883 = vmatpush.bf16.msra.mxu3 %v1049_v53 }
 0x22b   : > { %571 = vrot.lane.b32.xlu1 %v1226_v7, %s1120_s15  ;;  %v686_v63 = vpop.permute.xlu2 %685 }
 0x22c   : > { %v691_v3 = vsel %vm518_vm2, %v686_v63, 0 }
 0x22e   : > { %v1088_v56 = vpop.eup %1087 }
 0x22f   : > { %v679_v57 = vsel %vm480_vm1, %v1088_v56, 0.0 }
 0x230   : > { %566 = vadd.xlane.f32.xlu0 %v565_v55 }
 0x238   : > { %680 = vadd.xlane.f32.xlu0 %v679_v57 }
 0x24c   : > { %628 = vrot.lane.b32.xlu0 %v1226_v7, %s1121_s16 }
 0x285   : > { %v509_v58 = vpop.xlane.xlu1 %508 }
 0x286   : > { %1089 = vrcp.f32 %v509_v58  ;;  %v1047_v58 = vld [vmem:[%s1335_s9 + $0x8] sm:$0xff] }
 0x28c   : > { %v1090_v59 = vpop.eup %1089 }
 0x28d   : > { %v511_v60 = vmul.f32 %v1090_v59, %v1082_v39 }
 0x28f   : > { %v512_v61 = vpack.c.bf16 %v511_v60, %v511_v60 }
 0x291   : > { %996 = vmatmul.msk.bf16.vlgmr.msra.gmra.mxu2 %vm480_vm1, %v512_v61 }
 0x29b   : > { %v624_v62 = vpop.xlane.xlu0 %623 }
 0x29d   : > { %v572_v0 = vpop.permute.xlu1 %571 }
 0x29e   : > { %v577_v1 = vsel %vm518_vm2, %v572_v0, 0 }
 0x29f   : > { %586 = vmatpush.bf16.msrb.mxu2 %v577_v1  ;;  %v1075_v1 = vld [vmem:[%s1331_s5] ss:$0 sm:$0xff] }
 0x2a3   : > { %700 = vmatpush.bf16.msra.mxu2 %v691_v3  ;;  %v567_v4 = vpop.xlane.xlu0 %566 }
 0x2a4   : > { %1091 = vrcp.f32 %v567_v4  ;;  %v1076_v4 = vld [vmem:[%s1332_s6] ss:$0 sm:$0xff] }
 0x2aa   : > { %v1092_v5 = vpop.eup %1091 }
 0x2ab   : > { %v569_v6 = vmul.f32 %v1092_v5, %v1086_v54  ;;  %v681_v7 = vpop.xlane.xlu0 %680 }
 0x2ac   : > { %1093 = vrcp.f32 %v681_v7 }
 0x2ad   : > { %v570_v8 = vpack.c.bf16 %v569_v6, %v569_v6  ;;  %1095 = vrcp.f32 %v624_v62 }
 0x2ae   : > { %1097 = vrcp.f32 %v1125_v40 }
 0x2af   : > { %998 = vmatmul.msk.bf16.vlgmr.msrb.gmra.mxu2 %vm480_vm1, %v570_v8 }
 0x2b2   : > { %v1094_v9 = vpop.eup %1093 }
 0x2b3   : > { %v683_v10 = vmul.f32 %v1094_v9, %v1088_v56  ;;  %v1096_v11 = vpop.eup %1095  ;;  %v1048_v56 = vld [vmem:[%s1335_s9 + $0x10] sm:$0xff]  ;;  %v1046_v9 = vld [vmem:[%s1335_s9] sm:$0xff] }
 0x2b4   : > { %v626_v12 = vmul.f32 %v1096_v11, %v1084_v50  ;;  %v1098_v41 = vpop.eup %1097  ;;  %884 = vmatpush.bf16.msra.mxu3 %v1048_v56 }
 0x2b5   : > { %v684_v13 = vpack.c.bf16 %v683_v10, %v683_v10  ;;  %v765_v42 = vmul.f32 32.0, %v1098_v41  ;;  %vm769_vm5 = vweird.f32 %v1098_v41  ;;  %v1077_v10 = vld [vmem:[%s1334_s8] ss:$0 sm:$0xff] }
 0x2b6   : > { %v627_v16 = vpack.c.bf16 %v626_v12, %v626_v12 }
 0x2b7   : > { %v766_v43 = vsub.f32 1.0, %v765_v42 }
 0x2b8   : > { %885 = vmatpush.bf16.msra.mxu3 %v1047_v58 }
 0x2b9   : > { %v767_v44 = vmul.f32 %v1098_v41, %v766_v43 }
 0x2bb   : > { %v768_v45 = vadd.f32 %v1098_v41, %v767_v44 }
 0x2bc   : > { %886 = vmatpush.bf16.msra.mxu3 %v1046_v9 }
 0x2bd   : > { %v770_v46 = vsel %vm769_vm5, %v1098_v41, %v768_v45 }
 0x2be   : > { %v629_v14 = vpop.permute.xlu0 %628 }
 0x2bf   : > { %1002 = vmatmul.msk.bf16.vlgmr.msra.gmra.mxu2 %vm480_vm1, %v684_v13  ;;  %v634_v15 = vsel %vm518_vm2, %v629_v14, 0 }
 0x2c0   : > { %643 = vmatpush.bf16.msrb.mxu1 %v634_v15 }
 0x2c3   : > { %1000 = vmatmul.msk.bf16.vlgmr.msrb.gmra.mxu1 %vm480_vm1, %v627_v16  ;;  %v1078_v16 = vld [vmem:[%s1336_s10] ss:$0 sm:$0xff] }
 0x314   : > { %v531_v17 = vpop.f32.mrf.mxu2 }
 0x31c   : > { %v533_v18 = vpop.f32.mrf.mxu2 }
 0x332   : > { %v588_v19 = vpop.f32.mrf.mxu2 }
 0x333   : > { %707 = vrot.lane.b32.xlu1 %v588_v19, %s1122_s17 }
 0x33a   : > { %v590_v20 = vpop.f32.mrf.mxu2 }
 0x340   : > { %v645_v21 = vpop.f32.mrf.mxu1 }
 0x341   : > { %711 = vrot.lane.b32.xlu2 %v645_v21, %s1123_s18 }
 0x342   : > { %v702_v22 = vpop.f32.mrf.mxu2 }
 0x343   : > { %715 = vrot.lane.b32.xlu1 %v702_v22, %s1124_s19 }
 0x348   : > { %v647_v23 = vpop.f32.mrf.mxu1 }
 0x34a   : > { %v704_v24 = vpop.f32.mrf.mxu2 }
 0x39b   : > { %v712_v29 = vpop.permute.xlu2 %711 }
 0x3a5   : > { %v708_v27 = vpop.permute.xlu1 %707 }
 0x3a6   : > { %v718_v28 = vsel %vm480_vm1, %v531_v17, %v708_v27 }
 0x3a7   : > { %v720_v31 = vsel %vm719_vm3, %v718_v28, %v712_v29 }
 0x3b5   : > { %v716_v30 = vpop.permute.xlu1 %715 }
 0x3b6   : > { %v722_v32 = vsel %vm721_vm4, %v720_v31, %v716_v30 }
 0x3b7   : > { %v723_v33 = vpack.c.bf16 %v722_v32, %v722_v32 }
 0x3b9   : > { %1011 = vmatmul.msk.bf16.vlgmr.msra.gmra.mxu0 %vm459_vm0, %v723_v33 }
 0x436   : > { %v756_v35 = vpop.f32.mrf.mxu0 }
 0x437   : > { %v757_v36 = vadd.f32 %v1074_v34, %v756_v35 }
 0x439   : > { %v760_v37 = vadd.f32 %v757_v36, %v1218_v2  ;;  %v1045_v2 = vld [vmem:[%s1333_s7 + $0x8] sm:$0xff]  ;;  %v1079_v36 = vld [vmem:[%s1337_s11] ss:$0 sm:$0xff] }
 0x43a   : > { %830 = vmatpush.bf16.msra.mxu1 %v1045_v2 }
 0x43b   : > { %v761_v38 = vsel %vm459_vm0, %v760_v37, 0.0 }
 0x43c   : > { %762 = vadd.xlane.f32.xlu2 %v761_v38  ;;  %v1080_v38 = vld [vmem:[%s1338_s12] ss:$0 sm:$0xff] }
 0x43e   : > { %v758_v39 = vpop.f32.mrf.mxu0  ;;  %831 = vmatpush.bf16.msra.mxu1 %v1044_v52 }
 0x4af   : > { %v763_v47 = vpop.xlane.xlu2 %762 }
 0x4b0   : > { %v771_v48 = vmul.f32 %v770_v46, %v763_v47 }
 0x4b2   : > { %v772_v49 = vsub.f32 %v760_v37, %v771_v48 }
 0x4b4   : > { %v773_v50 = vmul.f32 %v772_v49, %v772_v49 }
 0x4b6   : > { %v774_v51 = vsel %vm459_vm0, %v773_v50, 0.0 }
 0x4b7   : > { %775 = vadd.xlane.f32.xlu1 %v774_v51 }
 0x52a   : > { %v776_v54 = vpop.xlane.xlu1 %775 }
 0x52b   : > { %v777_v55 = vmul.f32 %v776_v54, %v770_v46 }
 0x52d   : > { %v778_v57 = vadd.f32 1e-05, %v777_v55 }
 0x52f   : > { %1099 = vrsqrt.f32 %v778_v57  ;;  %vm785_vm7 = vweird.f32 %v778_v57 }
 0x535   : > { %v1100_v59 = vpop.eup %1099 }
 0x536   : > { %v780_v60 = vmul.f32 %v1100_v59, %v778_v57  ;;  %vm786_vm6 = vweird.f32 %v1100_v59 }
 0x537   : > { %vm787_vm8 = vmor %vm785_vm7, %vm786_vm6 }
 0x538   : > { %v781_v61 = vmul.f32 %v1100_v59, %v780_v60 }
 0x53a   : > { %v782_v62 = vmul.f32 0.5, %v781_v61 }
 0x53c   : > { %v783_v63 = vsub.f32 1.5, %v782_v62 }
 0x53e   : > { %v784_v0 = vmul.f32 %v1100_v59, %v783_v63 }
 0x540   : > { %v788_v3 = vsel %vm787_vm8, %v1100_v59, %v784_v0 }
 0x541   : > { %v789_v5 = vmul.f32 %v788_v3, %v772_v49 }
 0x543   : > { %v794_v6 = vmul.f32 %v1075_v1, %v789_v5 }
 0x545   : > { %v799_v7 = vadd.f32 %v1076_v4, %v794_v6 }
 0x547   : > { %v800_v8 = vpack.c.bf16 %v799_v7, %v799_v7 }
 0x549   : > { %1020 = vmatmul.msk.bf16.vlgmr.msra.gmra.mxu1 %vm459_vm0, %v800_v8 }
 0x5c6   : > { %v833_v11 = vpop.f32.mrf.mxu1 }
 0x5c7   : > { %v834_v12 = vadd.f32 %v1077_v10, %v833_v11 }
 0x5c9   : > { %v837_v13 = vmax.f32 %v834_v12, 0.0 }
 0x5cb   : > { %v838_v14 = vpack.c.bf16 %v837_v13, %v837_v13 }
 0x5cd   : > { %1037 = vmatmul.msk.bf16.vlgmr.msra.gmra.mxu3 %vm875_vm9, %v838_v14 }
 0x5ce   : > { %v835_v15 = vpop.f32.mrf.mxu1 }
 0x650   : > { %v888_v17 = vpop.f32.mrf.mxu3 }
 0x651   : > { %v889_v18 = vadd.f32 %v1078_v16, %v888_v17 }
 0x653   : > { %v892_v19 = vadd.f32 %v889_v18, %v799_v7 }
 0x655   : > { %v893_v20 = vsel %vm459_vm0, %v892_v19, 0.0 }
 0x656   : > { %894 = vadd.xlane.f32.xlu0 %v893_v20 }
 0x658   : > { %v890_v21 = vpop.f32.mrf.mxu3 }
 0x6c9   : > { %v895_v22 = vpop.xlane.xlu0 %894 }
 0x6ca   : > { %v896_v23 = vmul.f32 %v895_v22, %v770_v46 }
 0x6cc   : > { %v897_v24 = vsub.f32 %v892_v19, %v896_v23 }
 0x6ce   : > { %v898_v25 = vmul.f32 %v897_v24, %v897_v24 }
 0x6d0   : > { %v899_v26 = vsel %vm459_vm0, %v898_v25, 0.0 }
 0x6d1   : > { %900 = vadd.xlane.f32.xlu2 %v899_v26 }
 0x744   : > { %v901_v27 = vpop.xlane.xlu2 %900 }
 0x745   : > { %v902_v28 = vmul.f32 %v901_v27, %v770_v46 }
 0x747   : > { %v903_v29 = vadd.f32 1e-05, %v902_v28 }
 0x749   : > { %1101 = vrsqrt.f32 %v903_v29  ;;  %vm910_vm11 = vweird.f32 %v903_v29 }
 0x74f   : > { %v1102_v30 = vpop.eup %1101 }
 0x750   : > { %v905_v31 = vmul.f32 %v1102_v30, %v903_v29  ;;  %vm911_vm10 = vweird.f32 %v1102_v30 }
 0x751   : > { %vm912_vm12 = vmor %vm910_vm11, %vm911_vm10 }
 0x752   : > { %v906_v32 = vmul.f32 %v1102_v30, %v905_v31 }
 0x754   : > { %v907_v33 = vmul.f32 0.5, %v906_v32 }
 0x756   : > { %v908_v34 = vsub.f32 1.5, %v907_v33 }
 0x758   : > { %v909_v35 = vmul.f32 %v1102_v30, %v908_v34 }
 0x75a   : > { %v913_v37 = vsel %vm912_vm12, %v1102_v30, %v909_v35 }
 0x75b   : > { %v914_v39 = vmul.f32 %v913_v37, %v897_v24 }
 0x75d   : > { %v919_v40 = vmul.f32 %v1079_v36, %v914_v39 }
 0x75f   : > { %v924_v41 = vadd.f32 %v1080_v38, %v919_v40 }
 0x761   : > { %925 = vst.msk [vmem:[%s435_s24] sm:$0xff] %vm459_vm0, %v924_v41 }
 0x762 PF: > { %s23_s25 = sadd.s32 1, %s1109_s25  }
 0x763   : > { %p20_p4 = scmp.ge.s32.totalorder %s23_s25, 4  }
 0x765   :  { %22 = sbr.rel (!%p20_p4) target bundleno = 1 (0x1), region = 102 }

</bundles_post_ra>
